<compile_context>
chip_gen: v7x
topology: tpu7x:2x2x1
jax: 0.10.0
libtpu: 0.0.40
codegen_flags: <defaults>
</compile_context>

<pallas_src>
import functools

import jax
import jax.numpy as jnp
from jax.experimental import pallas as pl
from jax.experimental.pallas import tpu as pltpu


def _em_spread_loss_kernel(margin_ref, target_ref, x_ref, out_ref, *,
                           total_b, needs_mask):
    # margin_ref: SMEM (1, 1) f32            scalar margin
    # target_ref: VMEM (1, TB) int32         targets, batch on lanes
    # x_ref:      VMEM (E, TB) x.dtype       logits, batch on lanes
    # out_ref:    VMEM (8, 128) f32          per-block partial sum (at [0, 0])
    x = x_ref[...].astype(jnp.float32)            # single upcast per tile
    tgt = target_ref[...]                         # (1, TB) int32
    margin = margin_ref[0, 0]

    e, tb = x.shape
    # one-hot gather along sublanes: at[0, j] = x[target[j], j]
    row = jax.lax.broadcasted_iota(jnp.int32, (e, tb), 0)
    at = jnp.sum(jnp.where(row == tgt, x, 0.0), axis=0, keepdims=True)  # (1,TB)

    # spread loss: max(margin - (at - x), 0)^2 == max((margin - at) + x, 0)^2
    margin_minus_at = margin - at                  # (1, TB) cheap row op
    hinge = jnp.maximum(x + margin_minus_at, 0.0)  # (E, TB)
    sq = hinge * hinge

    # per-block partial: scalar sum written into position [0, 0] of the tile
    r_io = jax.lax.broadcasted_iota(jnp.int32, out_ref.shape, 0)
    c_io = jax.lax.broadcasted_iota(jnp.int32, out_ref.shape, 1)
    at_origin = (r_io == 0) & (c_io == 0)

    def write(total):
        out_ref[...] = jnp.where(at_origin, total, 0.0)

    if not needs_mask:
        # B is a multiple of the tile: no tail mask anywhere (fast path).
        write(jnp.sum(sq))
    else:
        i = pl.program_id(0)
        last = pl.num_programs(0) - 1

        @pl.when(i != last)
        def _full_tile():
            write(jnp.sum(sq))

        @pl.when(i == last)
        def _partial_tile():
            # Garbage (possibly NaN) tail columns are zeroed before the sum;
            # jnp.where never propagates NaN from the unselected operand.
            col = jax.lax.broadcasted_iota(jnp.int32, (e, tb), 1) + i * tb
            write(jnp.sum(jnp.where(col < total_b, sq, 0.0)))


def _default_block_b(b, e):
    """Batch-tile width (multiple of 128).

    Sized so one x tile is ~1.25 MiB: each grid step then moves ~1.4 MB of
    HBM traffic (per-step overhead amortized on v5e/v6e/v7x) while
    double-buffered inputs plus in-kernel f32 temporaries stay well inside
    v7x's 32 MiB scoped VMEM.
    """
    x_tile_budget = 1_310_720                      # ~1.25 MiB of x per tile
    tb = x_tile_budget // (e * 4)
    tb = max(128, min(tb, 65536))
    tb = (tb // 128) * 128
    tb = min(tb, max(128, -(-b // 128) * 128))     # don't over-pad tiny batches
    return tb


def em_routing_loss(x, target, epoch=None, max_epoch=10, block_b=None):
    """Pallas equivalent of EmRoutingLoss(max_epoch).forward(x, target, epoch)."""
    margin_init = 0.2
    margin_step = 0.2 / max_epoch
    if epoch is None:
        margin = 0.9
    else:
        # epoch must stay a static Python int (host-side min), like the module.
        margin = margin_init + margin_step * min(epoch, max_epoch)

    b, e = x.shape
    if block_b is None:
        block_b = _default_block_b(b, e)
    block_b = max(128, (int(block_b) // 128) * 128)

    n_blocks = -(-b // block_b)
    needs_mask = (b % block_b) != 0

    # Lane-dense layout: batch on lanes, classes on sublanes.  No jnp.pad and
    # no transposed copy kept around: the last (partial) block is masked in
    # the kernel, and allow_input_fusion lets XLA fuse the transpose.
    x_t = x.T                                           # (E, B)
    target_t = target.astype(jnp.int32).reshape(1, b)   # (1, B)
    margin_arr = jnp.full((1, 1), margin, dtype=jnp.float32)

    kernel = functools.partial(_em_spread_loss_kernel, total_b=b,
                               needs_mask=needs_mask)

    partials = pl.pallas_call(
        kernel,
        out_shape=jax.ShapeDtypeStruct((n_blocks * 8, 128), jnp.float32),
        grid_spec=pltpu.PrefetchScalarGridSpec(
            num_scalar_prefetch=0,
            grid=(n_blocks,),
            in_specs=[
                pl.BlockSpec(memory_space=pltpu.MemorySpace.SMEM),  # margin
                pl.BlockSpec((1, block_b), lambda i: (0, i)),       # target
                pl.BlockSpec((e, block_b), lambda i: (0, i)),       # x
            ],
            out_specs=pl.BlockSpec((8, 128), lambda i: (i, 0)),     # partials
        ),
        compiler_params=pltpu.CompilerParams(
            # per-block disjoint outputs -> safe to shard across v7x's 2 TCs
            dimension_semantics=("parallel",),
            # let XLA fuse the x transpose into the pallas_call operand
            allow_input_fusion=[False, False, True],
            vmem_limit_bytes=32 * 1024 * 1024,
        ),
    )(margin_arr, target_t, x_t)

    # host-side reduction of the tiny partials + /B normalization; cast back
    # to the input dtype like the PyTorch module.
    return (jnp.sum(partials) / jnp.float32(b)).astype(x.dtype)


def _reference_loss(x, target, epoch=None, max_epoch=10):
    # pure-JAX reference mirroring the PyTorch forward exactly (f32 math)
    if epoch is None:
        margin = 0.9
    else:
        margin = 0.2 + (0.2 / max_epoch) * min(epoch, max_epoch)
    b, _ = x.shape
    at = x[jnp.arange(b), target].reshape(b, 1)
    hinge = jnp.maximum(margin - (at - x), 0.0)
    return jnp.mean(jnp.sum(hinge ** 2, axis=1))


if __name__ == "__main__":
    key = jax.random.PRNGKey(0)
    kx, kt = jax.random.split(key)

    B, E = 300, 10          # CIFAR-10-style logits; B=300 exercises tail masking
    x = jax.random.normal(kx, (B, E), dtype=jnp.float32)
    target = jax.random.randint(kt, (B,), 0, E, dtype=jnp.int32)

    # epoch-dependent margin; block_b=128 -> 3 grid steps, last one masked
    loss = jax.block_until_ready(em_routing_loss(x, target, epoch=3,
                                                 max_epoch=10, block_b=128))
    ref = _reference_loss(x, target, epoch=3, max_epoch=10)
    assert jnp.allclose(loss, ref, rtol=1e-5, atol=1e-5), (loss, ref)

    # epoch=None path (margin = 0.9), auto tile size (single, partial block)
    loss2 = jax.block_until_ready(em_routing_loss(x, target, epoch=None))
    ref2 = _reference_loss(x, target, epoch=None)
    assert jnp.allclose(loss2, ref2, rtol=1e-5, atol=1e-5), (loss2, ref2)

    # bf16 inputs: DMA stays bf16, accumulation is f32 inside the kernel
    xb = x.astype(jnp.bfloat16)
    loss3 = jax.block_until_ready(em_routing_loss(xb, target, epoch=3,
                                                  max_epoch=10, block_b=128))
    ref3 = _reference_loss(x, target, epoch=3, max_epoch=10)
    assert jnp.allclose(jnp.float32(loss3), ref3, rtol=5e-2, atol=5e-2), (loss3, ref3)

    # exact-multiple batch: unmasked fast path (no tail mask traced at all)
    B2 = 256
    x2 = jax.random.normal(kx, (B2, E), dtype=jnp.float32)
    t2 = jax.random.randint(kt, (B2,), 0, E, dtype=jnp.int32)
    loss4 = jax.block_until_ready(em_routing_loss(x2, t2, epoch=7,
                                                  max_epoch=10, block_b=128))
    ref4 = _reference_loss(x2, t2, epoch=7, max_epoch=10)
    assert jnp.allclose(loss4, ref4, rtol=1e-5, atol=1e-5), (loss4, ref4)

    print("KERNEL_OK")
</pallas_src>

<mosaic_0001>
module attributes {stable_mosaic.version = 11 : i64} {
  func.func @_em_spread_loss_kernel(%arg0: i32, %arg1: memref<1x1xf32, #tpu.memory_space<smem>>, %arg2: memref<1x128xi32, #tpu.memory_space<vmem>>, %arg3: memref<10x128xf32, #tpu.memory_space<vmem>>, %arg4: memref<8x128xf32, #tpu.memory_space<vmem>>) attributes {dimension_semantics = [#tpu.dimension_semantics<parallel>], iteration_bounds = array<i64: 3>, scalar_prefetch = 0 : i64, scratch_operands = 0 : i64, tpu.core_type = #tpu.core_type<tc>, window_params = [{transform_indices = @transform_0, window_bounds = array<i64: 1, 1>}, {transform_indices = @transform_1, window_bounds = array<i64: 1, 128>}, {transform_indices = @transform_2, window_bounds = array<i64: 10, 128>}, {transform_indices = @transform_3, window_bounds = array<i64: 8, 128>}]} {
    %c0 = arith.constant 0 : index
    %c0_0 = arith.constant 0 : index
    %0 = vector.load %arg3[%c0, %c0_0] : memref<10x128xf32, #tpu.memory_space<vmem>>, vector<10x128xf32>
    %c0_1 = arith.constant 0 : index
    %c0_2 = arith.constant 0 : index
    %1 = vector.load %arg2[%c0_1, %c0_2] : memref<1x128xi32, #tpu.memory_space<vmem>>, vector<1x128xi32>
    %c0_3 = arith.constant 0 : index
    %c0_4 = arith.constant 0 : index
    %2 = memref.load %arg1[%c0_3, %c0_4] : memref<1x1xf32, #tpu.memory_space<smem>>
    %3 = tpu.iota {dimensions = array<i32: 0>} : vector<10x128xi32>
    %4 = vector.broadcast %1 : vector<1x128xi32> to vector<10x128xi32>
    %5 = arith.cmpi eq, %3, %4 : vector<10x128xi32>
    %cst = arith.constant 0.000000e+00 : f32
    %6 = vector.broadcast %cst : f32 to vector<10x128xf32>
    %7 = arith.select %5, %0, %6 : vector<10x128xi1>, vector<10x128xf32>
    %cst_5 = arith.constant dense<0.000000e+00> : vector<128xf32>
    %8 = vector.multi_reduction <add>, %7, %cst_5 [0] : vector<10x128xf32> to vector<128xf32>
    %9 = vector.shape_cast %8 : vector<128xf32> to vector<1x128xf32>
    %10 = vector.broadcast %2 : f32 to vector<1x128xf32>
    %11 = arith.subf %10, %9 : vector<1x128xf32>
    %12 = vector.broadcast %11 : vector<1x128xf32> to vector<10x128xf32>
    %13 = arith.addf %0, %12 : vector<10x128xf32>
    %cst_6 = arith.constant 0.000000e+00 : f32
    %14 = vector.broadcast %cst_6 : f32 to vector<10x128xf32>
    %15 = arith.maximumf %13, %14 : vector<10x128xf32>
    %16 = arith.mulf %15, %15 : vector<10x128xf32>
    %17 = tpu.iota {dimensions = array<i32: 0>} : vector<8x128xi32>
    %18 = tpu.iota {dimensions = array<i32: 1>} : vector<8x128xi32>
    %c0_i32 = arith.constant 0 : i32
    %19 = vector.broadcast %c0_i32 : i32 to vector<8x128xi32>
    %20 = arith.cmpi eq, %17, %19 : vector<8x128xi32>
    %c0_i32_7 = arith.constant 0 : i32
    %21 = vector.broadcast %c0_i32_7 : i32 to vector<8x128xi32>
    %22 = arith.cmpi eq, %18, %21 : vector<8x128xi32>
    %23 = arith.andi %20, %22 : vector<8x128xi1>
    %c2_i32 = arith.constant 2 : i32
    %24 = arith.cmpi ne, %arg0, %c2_i32 : i32
    %25 = arith.extui %24 : i1 to i32
    %c0_i32_8 = arith.constant 0 : i32
    %26 = arith.cmpi ne, %25, %c0_i32_8 : i32
    scf.if %26 {
      %30 = vector.shape_cast %16 : vector<10x128xf32> to vector<1x10x128xf32>
      %cst_11 = arith.constant dense<0.000000e+00> : vector<1xf32>
      %31 = vector.multi_reduction <add>, %30, %cst_11 [1, 2] : vector<1x10x128xf32> to vector<1xf32>
      %32 = vector.shape_cast %31 : vector<1xf32> to vector<1x1x1xf32>
      %33 = vector.extract %32[0, 0, 0] : f32 from vector<1x1x1xf32>
      %cst_12 = arith.constant 0.000000e+00 : f32
      %34 = vector.broadcast %33 : f32 to vector<8x128xf32>
      %35 = vector.broadcast %cst_12 : f32 to vector<8x128xf32>
      %36 = arith.select %23, %34, %35 : vector<8x128xi1>, vector<8x128xf32>
      %c0_13 = arith.constant 0 : index
      %c0_14 = arith.constant 0 : index
      %37 = vector.load %arg4[%c0_13, %c0_14] : memref<8x128xf32, #tpu.memory_space<vmem>>, vector<8x128xf32>
      tpu.vector_store %arg4[%c0_13, %c0_14], %36 {strides = array<i32>} : memref<8x128xf32, #tpu.memory_space<vmem>>, vector<8x128xf32>,
    } else {
    }
    %c2_i32_9 = arith.constant 2 : i32
    %27 = arith.cmpi eq, %arg0, %c2_i32_9 : i32
    %28 = arith.extui %27 : i1 to i32
    %c0_i32_10 = arith.constant 0 : i32
    %29 = arith.cmpi ne, %28, %c0_i32_10 : i32
    scf.if %29 {
      %30 = tpu.iota {dimensions = array<i32: 1>} : vector<10x128xi32>
      %c128_i32 = arith.constant 128 : i32
      %31 = arith.muli %arg0, %c128_i32 : i32
      %32 = vector.broadcast %31 : i32 to vector<10x128xi32>
      %33 = arith.addi %30, %32 : vector<10x128xi32>
      %c300_i32 = arith.constant 300 : i32
      %34 = vector.broadcast %c300_i32 : i32 to vector<10x128xi32>
      %35 = arith.cmpi slt, %33, %34 : vector<10x128xi32>
      %cst_11 = arith.constant 0.000000e+00 : f32
      %36 = vector.broadcast %cst_11 : f32 to vector<10x128xf32>
      %37 = arith.select %35, %16, %36 : vector<10x128xi1>, vector<10x128xf32>
      %38 = vector.shape_cast %37 : vector<10x128xf32> to vector<1x10x128xf32>
      %cst_12 = arith.constant dense<0.000000e+00> : vector<1xf32>
      %39 = vector.multi_reduction <add>, %38, %cst_12 [1, 2] : vector<1x10x128xf32> to vector<1xf32>
      %40 = vector.shape_cast %39 : vector<1xf32> to vector<1x1x1xf32>
      %41 = vector.extract %40[0, 0, 0] : f32 from vector<1x1x1xf32>
      %cst_13 = arith.constant 0.000000e+00 : f32
      %42 = vector.broadcast %41 : f32 to vector<8x128xf32>
      %43 = vector.broadcast %cst_13 : f32 to vector<8x128xf32>
      %44 = arith.select %23, %42, %43 : vector<8x128xi1>, vector<8x128xf32>
      %c0_14 = arith.constant 0 : index
      %c0_15 = arith.constant 0 : index
      %45 = vector.load %arg4[%c0_14, %c0_15] : memref<8x128xf32, #tpu.memory_space<vmem>>, vector<8x128xf32>
      tpu.vector_store %arg4[%c0_14, %c0_15], %44 {strides = array<i32>} : memref<8x128xf32, #tpu.memory_space<vmem>>, vector<8x128xf32>,
    } else {
    }
    return
  }
  func.func @transform_0(%arg0: i32) -> (i32, i32) {
    %c0_i32 = arith.constant 0 : i32
    %c0_i32_0 = arith.constant 0 : i32
    %c0_i32_1 = arith.constant 0 : i32
    return %c0_i32, %c0_i32_0 : i32, i32
  }
  func.func @transform_1(%arg0: i32) -> (i32, i32) {
    %c0_i32 = arith.constant 0 : i32
    %c0_i32_0 = arith.constant 0 : i32
    return %c0_i32, %arg0 : i32, i32
  }
  func.func @transform_2(%arg0: i32) -> (i32, i32) {
    %c0_i32 = arith.constant 0 : i32
    %c0_i32_0 = arith.constant 0 : i32
    return %c0_i32, %arg0 : i32, i32
  }
  func.func @transform_3(%arg0: i32) -> (i32, i32) {
    %c0_i32 = arith.constant 0 : i32
    %c0_i32_0 = arith.constant 0 : i32
    return %arg0, %c0_i32 : i32, i32
  }
}

</mosaic_0001>

<bundles_post_ra>
// kernel: tpu_custom_call.1
= control target key start
LH: loop header
LB: loop body
LE: loop exit
PB: predicated region body
PF: predicated region fallthrough
CT: control target
= control target key end

     0   :  { %s754_s0 = inlined_call_operand.<no memory space> [shape: f32[1,1], index: 0, kind: input, shape index: {}]   ;;  %s755_s1 = inlined_call_operand.vmem [shape: s32[1,300], index: 1, kind: input, shape index: {}]   ;;  %s756_s2 = inlined_call_operand.hbm [shape: f32[10,300], index: 2, kind: input, shape index: {}]   ;;  %s757_s3 = inlined_call_operand.hbm [shape: f32[24,128], index: 3, kind: output, shape index: {}]  }
   0x1   :  { %8 = sst [smem:[#allocation2]] %s754_s0 }
   0x2   :  { %9 = vsyncpa [#allocation4], 0 }
   0x3   :  { %11 = vsyncpa [#allocation4 + $0x1], 0 }
   0x4   :  { %12 = vsyncpa [#allocation5], 0 }
   0x5   :  { %14 = vsyncpa [#allocation5 + $0x1], 0  ;;  %s570_s14 = smov 0   ;;  %s572_s15 = smov 0  }
   0x6   :  { %s574_s16 = smov 0   ;;  %s576_s17 = smov 0  }
   0x7 LB: > { %s591_s0 = sadd.s32 4294967295, %s540_s17   ;;  %s375_s18 = sadd.s32 4294967294, %s540_s17   ;;  %s540_s17 = sphi %s576_s17, %s774_s17   ;;  %s536_s16 = sphi %s574_s16, %s773_s16   ;;  %s532_s15 = sphi %s572_s15, %s772_s15   ;;  %s528_s14 = sphi %s570_s14, %s771_s14  }
   0x8   : > { %s595_s19 = sadd.s32 1, %s540_s17   ;;  %s74_s20 = sadd.s32 1, %s536_s16 }
   0x9   : > { %s71_s21 = ssub.s32 %s540_s17, %s595_s19  ;;  %p81_p0 = scmp.ne.s32.totalorder %s536_s16, %s532_s15 }
   0xa   : > { %p72_p1 = scmp.eq.s32.totalorder %s71_s21, 0  ;;  %p82_p2 = scmp.eq.s32.totalorder %s540_s17, 0 }
   0xb   : > { %p87_p3 = scmp.ne.s32.totalorder %s532_s15, %s528_s14  ;;  %p88_p4 = scmp.eq.s32.totalorder %s591_s0, 0 }
   0xc   : > { %s607_s22 = scalar_select %p72_p1, %s536_s16, %s74_s20  }
   0xd   : > { %p609_p5 = por %p82_p2, %p81_p0  ;;  %p613_p6 = por %p88_p4, %p87_p3 }
   0xe   : > { %p758_p7 = scmp.eq.s32.totalorder %s591_s0, 2  ;;  %p117_p8 = scmp.eq.s32.totalorder %s375_s18, 2 }
   0xf   : > { %p407_p9 = scmp.lt.s32.totalorder %s540_s17, 3  ;;  %s146_s27 = sand.u32 1, %s536_s16  }
  0x10   : > { %p621_p10 = por %p758_p7, %p81_p0  ;;  %p625_p11 = por %p117_p8, %p87_p3 }
  0x11   : > { %s379_s28 = sshll.u32 %s540_s17, 7  ;;  %s378_s29 = sshll.u32 %s146_s27, 4 }
  0x12   : > { %s762_s25 = scalar_select %p621_p10, 1, 0 }
  0x13   : > { %s763_s26 = scalar_select %p625_p11, 1, 0 }
  0x14   : > { %s634_s5 = scalar_lea.hbm %s756_s2, %s379_s28  ;;  %s150_s6 = scalar_lea.vmem [#allocation3], %s378_s29 }
  0x15   : > { %s156_s7 = sshll.u32 %s150_s6, 4  ;;  %p638_p12 = pnand %p407_p9, %p609_p5  ;;  %s642_s7 = int_to_ptr.vmem [resolvable:$true] %s156_s7 }
  0x16   : > { %s645_s9 = scalar_lea.sflag [#allocation4], %s146_s27  ;;  %s444_s10 = scalar_lea.hbm %s634_s5, 256 }
  0x17   : > { %p445_p0 = scmp.ne.s32.totalorder %s634_s5, %s444_s10  ;;  %p446_p1 = pneg %p638_p12 }
  0x18   : > { %s449_s13 = scalar_lea.hbm %s756_s2, 768  ;;  %p450_p4 = scmp.lt.u32.totalorder %s634_s5, %s756_s2 }
  0x19   : > { %p447_p2 = pnand %p446_p1, %p445_p0  ;;  %p451_p5 = scmp.lt.u32.totalorder %s449_s13, %s444_s10 }
  0x1a   : > { %p453_p9 = scmp.lt.u32.totalorder %s444_s10, %s634_s5 }
  0x1b   : > { %p448_p3 = pneg %p447_p2  ;;  %p452_p8 = por %p451_p5, %p450_p4 }
  0x1d   : > { %p454_p7 = por %p453_p9, %p452_p8 }
  0x1f   : > { %p455_p13 = pnand %p454_p7, %p448_p3 }
  0x21   : > { %458 = shalt.err (!%p455_p13)
}
  0x22   : > { %s459_s21 = scalar_lea.vmem %s642_s7, 256  ;;  %s542_s23 = smov [#allocation3]  }
  0x23   : > { %p460_p0 = scmp.ne.s32.totalorder %s642_s7, %s459_s21  ;;  %s464_s27 = sshll.u32 %s542_s23, 4  ;;  %s465_s27 = int_to_ptr.vmem [resolvable:$false] %s464_s27 }
  0x24   : > { %s466_s28 = scalar_lea.vmem %s465_s27, 512  ;;  %p467_p10 = scmp.lt.s32.totalorder %s642_s7, %s465_s27 }
  0x25   : > { %p462_p2 = pnand %p460_p0, %p446_p1  ;;  %p468_p4 = scmp.lt.s32.totalorder %s466_s28, %s459_s21 }
  0x27   : > { %p463_p11 = pneg %p462_p2  ;;  %p469_p5 = por %p468_p4, %p467_p10 }
  0x29   : > { %p470_p8 = pnand %p469_p5, %p463_p11 }
  0x2b   : > { %473 = shalt.err (!%p470_p8)
}
  0x2c   : > { %s543_s29 = smov 384   ;;  %s544_s30 = smov 128  }
  0x2d   : > { %s545_s4 = smov 8   ;;  %p164_p7 = scmp.lt.s32.totalorder %s540_s17, 4 }
  0x2e   : > { %402 = dma.hbm_to_vmem [thread:$0]  (!%p638_p12), %s634_s5, 256, %s642_s7, %s645_s9, %s543_s29, %s544_s30, %s545_s4  }
  0x2f   : > { %p765_p13 = scmp.ge.s32.totalorder %s540_s17, 1 }
  0x31   : > { %p165_p1 = pnand %p765_p13, %p164_p7 }
  0x32   : > { %s677_s6 = sand.u32 (!%p165_p1), 1, %s532_s15  }
  0x33   : > { %168 = sbr.rel (%p165_p1) target bundleno = 542 (0x21e), region = 32  ;;  %s381_s10 = sshll.u32 (!%p165_p1), %s677_s6, 4 }
  0x34   : > { %s171_s11 = scalar_lea.sflag (!%p165_p1), [#allocation4], %s677_s6  ;;  %s174_s12 = scalar_lea.vmem (!%p165_p1), [#allocation3], %s381_s10 }
  0x3a   : > { %519 = dma.done.wait (%p613_p6), %s171_s11, 256  }
  0x3b   : > { %521 = vsyncadd (%p613_p6), %s171_s11, 4294967040  ;;  %p200_p10 = scmp.lt.s32.totalorder %s591_s0, 2  ;;  %v207_v0 = vlaneseq  ;;  %s382_s5 = sshll.u32 %s677_s6, 3  ;;  %v203_v5 = vld [vmem:[%s174_s12] sm:$0xff]  ;;  %v204_v6 = vld [vmem:[%s174_s12 + $0x8] sm:$0x3] }
  0x3c   : > { %vm218_vm3 = vcmask 1041408   ;;  %s206_s24 = sld [smem:[#allocation2]]  ;;  %s698_s18 = scalar_lea.vmem [#allocation6], %s382_s5 }
  0x3d   : > { %s201_s7 = scalar_select %p200_p10, %s591_s0, 2  ;;  %v208_v1 = vshrl.u32 %v207_v0, 7  ;;  %v236_v2 = vand.u32 127, %v207_v0 }
  0x3e   : > { %p768_p6 = scmp.eq.s32.totalorder %s591_s0, 2 }
  0x3f   : > { %s202_s13 = scalar_lea.vmem %s755_s1, %s201_s7  ;;  %v209_v3 = vadd.s32 8, %v208_v1  ;;  %vm237_vm0 = vcmp.eq.s32.totalorder %v208_v1, 0  ;;  %vm238_vm1 = vcmp.eq.s32.totalorder %v236_v2, 0 }
  0x40   : > { %vm691_vm2 = vmand %vm237_vm0, %vm238_vm1  ;;  %v383_v7 = vld [vmem:[%s202_s13] ss:$0 sm:$0xff] }
  0x41   : > { %vm214_vm4 = vcmp.eq.s32.totalorder %v208_v1, %v383_v7  ;;  %vm215_vm5 = vcmp.eq.s32.totalorder %v209_v3, %v383_v7 }
  0x42   : > { %v216_v8 = vsel %vm214_vm4, %v203_v5, 0.0  ;;  %v217_v9 = vsel %vm215_vm5, %v204_v6, 0.0  ;;  %v227_v17 = vstv %s206_s24 }
  0x43   : > { %v219_v10 = vsel %vm218_vm3, %v217_v9, 0.0 }
  0x44   : > { %v220_v11 = vadd.f32 %v219_v10, %v216_v8 }
  0x46   : > { %v221_v12 = vrot.slane %v220_v11, 4 }
  0x48   : > { %v222_v13 = vadd.f32 %v221_v12, %v220_v11 }
  0x4a   : > { %v223_v14 = vrot.slane %v222_v13, 2 }
  0x4c   : > { %v224_v15 = vadd.f32 %v223_v14, %v222_v13 }
  0x4e   : > { %v225_v16 = vrot.slane %v224_v15, 1 }
  0x50   : > { %v226_v18 = vadd.f32 %v225_v16, %v224_v15 }
  0x52   : > { %v228_v19 = vsub.f32 %v227_v17, %v226_v18  ;;  %243 = sbr.rel (%p768_p6) target bundleno = 300 (0x12c), region = 40 }
  0x54   : > { %v229_v20 = vadd.f32 %v228_v19, %v203_v5  ;;  %v230_v21 = vadd.f32 %v228_v19, %v204_v6 }
  0x56   : > { %v231_v22 = vmax.f32 %v229_v20, 0.0  ;;  %v232_v23 = vmax.f32 %v230_v21, 0.0 }
  0x58   : > { %v233_v24 = vmul.f32 %v231_v22, %v231_v22  ;;  %v234_v25 = vmul.f32 %v232_v23, %v232_v23 }
  0x5a   : > { %v244_v26 = vsel %vm218_vm3, %v234_v25, 0.0 }
  0x5b   : > { %v245_v27 = vadd.f32 %v244_v26, %v233_v24 }
  0x5d   : > { %246 = vadd.xlane.f32.xlu0 %v245_v27 }
  0xea   : > { %v247_v28 = vpop.xlane.xlu0 %246 }
  0xeb   : > { %v248_v29 = vrot.slane %v247_v28, 4 }
  0xed   : > { %v249_v30 = vadd.f32 %v248_v29, %v247_v28 }
  0xef   : > { %v250_v31 = vrot.slane %v249_v30, 2 }
  0xf1   : > { %v251_v32 = vadd.f32 %v250_v31, %v249_v30 }
  0xf3   : > { %v252_v33 = vrot.slane %v251_v32, 1 }
  0xf5   : > { %v253_v34 = vadd.f32 %v252_v33, %v251_v32 }
  0xf7   : > { %391 = vpush %v253_v34 }
 0x128   : > { %s392_s20 = spop %391 }
 0x129   : > { %v255_v35 = vstv %s392_s20 }
 0x12a   : > { %v256_v36 = vsel %vm691_vm2, %v255_v35, 0.0 }
 0x12b   : > { %257 = vst [vmem:[%s698_s18] sm:$0xff] %v256_v36 }
 0x12c PF: > { %p385_p11 = scmp.ne.s32.totalorder %s591_s0, 2 }
 0x12d   : > { %s386_s21 = sshll.u32 (!%p385_p11), %s591_s0, 7 }
 0x12e   : > { %261 = sbr.rel (%p385_p11) target bundleno = 517 (0x205), region = 44  ;;  %v263_v37 = vstv (!%p385_p11), %s386_s21 }
 0x12f   : > { %v264_v38 = vadd.s32 (!%p385_p11), %v263_v37, %v236_v2 }
 0x131   : > { %vm265_vm6 = vcmp.lt.s32.totalorder (!%p385_p11), %v264_v38, 300 }
 0x132   : > { %v266_v39 = vsel (!%p385_p11), %vm265_vm6, %v233_v24, 0.0  ;;  %v267_v40 = vsel (!%p385_p11), %vm265_vm6, %v234_v25, 0.0 }
 0x133   : > { %v268_v41 = vsel (!%p385_p11), %vm218_vm3, %v267_v40, 0.0 }
 0x134   : > { %v269_v42 = vadd.f32 (!%p385_p11), %v268_v41, %v266_v39 }
 0x136   : > { %270 = vadd.xlane.f32.xlu0 %v269_v42 }
 0x1c3   : > { %v271_v43 = vpop.xlane.xlu0 %270 }
 0x1c4   : > { %v272_v44 = vrot.slane %v271_v43, 4 }
 0x1c6   : > { %v273_v45 = vadd.f32 %v272_v44, %v271_v43 }
 0x1c8   : > { %v274_v46 = vrot.slane %v273_v45, 2 }
 0x1ca   : > { %v275_v47 = vadd.f32 %v274_v46, %v273_v45 }
 0x1cc   : > { %v276_v48 = vrot.slane %v275_v47, 1 }
 0x1ce   : > { %v277_v49 = vadd.f32 %v276_v48, %v275_v47 }
 0x1d0   : > { %393 = vpush %v277_v49 }
 0x201   : > { %s394_s23 = spop %393 }
 0x202   : > { %v279_v50 = vstv %s394_s23 }
 0x203   : > { %v280_v51 = vsel %vm691_vm2, %v279_v50, 0.0 }
 0x204   : > { %281 = vst [vmem:[%s698_s18] sm:$0xff] %v280_v51 }
 0x205 PF: > { %s388_s27 = sshll.u32 %s591_s0, 7  ;;  %s296_s4 = sshll.u32 %s698_s18, 4  ;;  %s297_s4 = int_to_ptr.vmem [resolvable:$true] %s296_s4 }
 0x206   : > { %s716_s30 = scalar_lea.hbm %s757_s3, %s388_s27  ;;  %s283_s10 = scalar_lea.sflag [#allocation5], %s677_s6 }
 0x207   : > { %s474_s11 = scalar_lea.vmem %s297_s4, 128  ;;  %p769_p3 = scmp.ne.s32.totalorder %s762_s25, 0 }
 0x208   : > { %p475_p12 = scmp.ne.s32.totalorder %s297_s4, %s474_s11  ;;  %s546_s12 = smov [#allocation6]  }
 0x209   : > { %s478_s5 = sshll.u32 %s546_s12, 4  ;;  %s479_s5 = int_to_ptr.vmem [resolvable:$false] %s478_s5 }
 0x20a   : > { %p476_p9 = pnand %p475_p12, %p769_p3  ;;  %s480_s7 = scalar_lea.vmem %s479_s5, 256 }
 0x20b   : > { %p481_p2 = scmp.lt.s32.totalorder %s297_s4, %s479_s5  ;;  %p482_p4 = scmp.lt.s32.totalorder %s480_s7, %s474_s11 }
 0x20c   : > { %p477_p0 = pneg %p476_p9 }
 0x20d   : > { %p483_p5 = por %p482_p4, %p481_p2 }
 0x20f   : > { %p484_p8 = pnand %p483_p5, %p477_p0 }
 0x211   : > { %487 = shalt.err (!%p484_p8)
}
 0x212   : > { %s488_s0 = scalar_lea.hbm %s716_s30, 128  ;;  %s492_s9 = scalar_lea.hbm %s757_s3, 384 }
 0x213   : > { %p489_p7 = scmp.ne.s32.totalorder %s716_s30, %s488_s0  ;;  %p493_p10 = scmp.lt.u32.totalorder %s716_s30, %s757_s3 }
 0x214   : > { %p494_p6 = scmp.lt.u32.totalorder %s492_s9, %s488_s0  ;;  %p496_p12 = scmp.lt.u32.totalorder %s488_s0, %s716_s30 }
 0x215   : > { %p490_p13 = pnand %p489_p7, %p769_p3 }
 0x216   : > { %p495_p11 = por %p494_p6, %p493_p10 }
 0x217   : > { %p491_p1 = pneg %p490_p13 }
 0x218   : > { %p497_p9 = por %p496_p12, %p495_p11 }
 0x21a   : > { %p498_p0 = pnand %p497_p9, %p491_p1 }
 0x21c   : > { %501 = shalt.err (!%p498_p0)
}
 0x21d   : > { %397 = dma.vmem_to_hbm [thread:$0]  (%p769_p3), %s297_s4, 128, %s716_s30, %s283_s10  }
 0x21e PF: > { %p408_p2 = scmp.ge.s32.totalorder %s540_s17, 2  ;;  %s308_s18 = sand.u32 1, %s528_s14  }
 0x21f   : > { %p770_p4 = scmp.ne.s32.totalorder %s763_s26, 0  ;;  %s309_s20 = scalar_lea.sflag [#allocation5], %s308_s18 }
 0x221   : > { %p404_p5 = pnand %p408_p2, %p770_p4 }
 0x223   : > { %523 = dma.done.wait (!%p404_p5), %s309_s20, 128  }
 0x224   : > { %525 = vsyncadd (!%p404_p5), %s309_s20, 4294967168  ;;  %p17_p8 = scmp.ge.s32.totalorder %s595_s19, 5   ;;  %s771_s14 = smov %s532_s15 }
 0x225   : > { %s772_s15 = smov %s536_s16  ;;  %s773_s16 = smov %s607_s22 }
 0x226   : > { %s774_s17 = smov %s595_s19  ;;  %19 = sbr.rel (!%p17_p8) target bundleno = 7 (0x7), region = 88 }
 0x22d   :  { %314 = vsyncpa [#allocation4], 1 }
 0x22e   :  { %316 = vsyncpa [#allocation4 + $0x1], 1 }
 0x22f   :  { %317 = vsyncpa [#allocation5], 1 }
 0x230   :  { %319 = vsyncpa [#allocation5 + $0x1], 1 }

</bundles_post_ra>
